<compile_context>
chip_gen: v7x
topology: tpu7x:2x2x1
jax: 0.10.0
libtpu: 0.0.40
codegen_flags: <defaults>
</compile_context>

<pallas_src>
import functools

import jax
import jax.numpy as jnp
from jax.experimental import pallas as pl
from jax.experimental.pallas import tpu as pltpu


def _encoder_kernel(inp_ref, w1_ref, w2_ref, bias_ref, adj_ref, out_ref,
                    *, d, n_hid, n_out, tb):
    """One grid step processes TB batch elements folded into the row dim.

    inp_ref : (tb*d, n_xdims)        folded (batch, node) rows
    w1_ref  : (n_xdims, n_hid)       fc1 weight, pre-transposed
    w2_ref  : (n_hid, n_out)         fc2 weight, pre-transposed
    bias_ref: (3, max(n_hid, n_out)) packed rows [b1; b2; Wa]
    adj_ref : (d, d)                 adj_Aforz = I - sinh(3*adj_A)^T
    out_ref : (tb*d, 2*n_out)        columns [0:n_out]=x, [n_out:2*n_out]=logits
    """
    b1 = bias_ref[0:1, :n_hid]          # (1, n_hid)
    b2 = bias_ref[1:2, :n_out]          # (1, n_out)
    wa = bias_ref[2:3, :n_out]          # (1, n_out)

    inp = inp_ref[...]                  # (tb*d, n_xdims)

    # fc1 + ReLU — single 2D matmul over the whole folded batch block.
    h1 = jnp.dot(inp, w1_ref[...], preferred_element_type=jnp.float32)
    h1 = jnp.maximum(h1 + b1, 0.0)      # (tb*d, n_hid)

    # fc2 — single 2D matmul.
    x = jnp.dot(h1, w2_ref[...], preferred_element_type=jnp.float32) + b2

    # logits = adj_Aforz @ (x + Wa) - Wa, applied per batch element of this
    # block (static unrolled loop; tb is small, everything stays in VMEM).
    adj = adj_ref[...]                  # (d, d)
    xw = x + wa                         # (tb*d, n_out)
    logit_rows = []
    for b in range(tb):
        lo = b * d
        logit_rows.append(
            jnp.dot(adj, xw[lo:lo + d, :],
                    preferred_element_type=jnp.float32) - wa)
    logits = logit_rows[0] if tb == 1 else jnp.concatenate(logit_rows, axis=0)

    # Single full-tile store (no narrow masked lane stores).
    out_ref[...] = jnp.concatenate([x, logits], axis=-1)


def _pick_block_b(B, cap=8):
    """Largest divisor of B that is <= cap (batches folded per grid step)."""
    for tb in range(min(B, cap), 0, -1):
        if B % tb == 0:
            return tb
    return 1


@jax.jit
def mlp_encoder_forward(inputs, adj_A, W1, b1, W2, b2, Wa, z, z_positive):
    """inputs: (B, n_xdims, d) — matches the PyTorch call convention.

    Returns the same tuple as MLPEncoder.forward:
      (x, logits, adj_A1, adj_A_eye, z, z_positive, adj_A, Wa)
    """
    B, n_xdims, d = inputs.shape
    n_hid = W1.shape[0]
    n_out = W2.shape[0]

    # ---- glue (fused by the surrounding jit) -------------------------------
    inp = jnp.transpose(inputs, (0, 2, 1)).astype(jnp.float32)   # (B, d, n_xdims)
    inp_flat = inp.reshape(B * d, n_xdims)                       # fold batch into M

    adj_A1 = jnp.sinh(3.0 * adj_A).astype(jnp.float32)           # (d, d)
    adj_A_eye = jnp.eye(d, dtype=jnp.float32)
    adj_Aforz = adj_A_eye - adj_A1.T                             # preprocess_adj_new

    # PyTorch Linear computes y = x @ W^T + b; pre-transpose the weights.
    w1_t = W1.T.astype(jnp.float32)                              # (n_xdims, n_hid)
    w2_t = W2.T.astype(jnp.float32)                              # (n_hid, n_out)

    # Pack b1 / b2 / Wa into one small operand (rows, zero-padded on lanes).
    wbias = max(n_hid, n_out)
    bias_pack = jnp.zeros((3, wbias), jnp.float32)
    bias_pack = bias_pack.at[0, :n_hid].set(b1.astype(jnp.float32))
    bias_pack = bias_pack.at[1, :n_out].set(b2.astype(jnp.float32))
    bias_pack = bias_pack.at[2, :n_out].set(Wa.astype(jnp.float32))

    tb = _pick_block_b(B)          # batches per grid step
    nb = B // tb                   # number of grid steps (1 for small B)

    kernel = functools.partial(_encoder_kernel,
                               d=d, n_hid=n_hid, n_out=n_out, tb=tb)

    grid_spec = pltpu.PrefetchScalarGridSpec(
        num_scalar_prefetch=0,
        grid=(nb,),
        in_specs=[
            pl.BlockSpec((tb * d, n_xdims), lambda i: (i, 0)),   # folded inputs
            pl.BlockSpec((n_xdims, n_hid),  lambda i: (0, 0)),   # W1^T
            pl.BlockSpec((n_hid, n_out),    lambda i: (0, 0)),   # W2^T
            pl.BlockSpec((3, wbias),        lambda i: (0, 0)),   # packed b1/b2/Wa
            pl.BlockSpec((d, d),            lambda i: (0, 0)),   # adj_Aforz
        ],
        out_specs=pl.BlockSpec((tb * d, 2 * n_out), lambda i: (i, 0)),
    )

    merged = pl.pallas_call(
        kernel,
        out_shape=jax.ShapeDtypeStruct((B * d, 2 * n_out), jnp.float32),
        grid_spec=grid_spec,
        compiler_params=pltpu.CompilerParams(
            dimension_semantics=("parallel",)),
    )(inp_flat, w1_t, w2_t, bias_pack, adj_Aforz)

    # Split the merged output and restore the (B, d, n_out) layout (fused by jit).
    x = merged[:, :n_out].reshape(B, d, n_out)
    logits = merged[:, n_out:].reshape(B, d, n_out)

    return (x, logits, adj_A1, adj_A_eye, z, z_positive,
            adj_A.astype(jnp.float32), Wa.astype(jnp.float32))


def _reference_forward(inputs, adj_A, W1, b1, W2, b2, Wa):
    """Pure-JAX reference replicating the PyTorch forward (for verification)."""
    inp = jnp.transpose(inputs, (0, 2, 1)).astype(jnp.float32)
    adj_A1 = jnp.sinh(3.0 * adj_A).astype(jnp.float32)
    adj_Aforz = jnp.eye(adj_A.shape[0], dtype=jnp.float32) - adj_A1.T
    H1 = jax.nn.relu(inp @ W1.T + b1)
    x = H1 @ W2.T + b2
    logits = jnp.einsum("ij,bjk->bik", adj_Aforz, x + Wa) - Wa
    return x, logits


if __name__ == "__main__":
    # Small shapes consistent with the module:
    #   d (= n_in = number of graph nodes) = 8, n_xdims = 4, n_hid = 32, n_out = 4
    B, d, n_xdims, n_hid, n_out = 2, 8, 4, 32, 4

    key = jax.random.PRNGKey(0)
    k_inp, k_adj, k_w1, k_b1, k_w2, k_b2 = jax.random.split(key, 6)

    # Deterministic parameter init (xavier-normal weights like init_weights()).
    xavier1 = (2.0 / (n_xdims + n_hid)) ** 0.5
    xavier2 = (2.0 / (n_hid + n_out)) ** 0.5
    W1 = xavier1 * jax.random.normal(k_w1, (n_hid, n_xdims), dtype=jnp.float32)
    b1 = 0.1 * jax.random.normal(k_b1, (n_hid,), dtype=jnp.float32)
    W2 = xavier2 * jax.random.normal(k_w2, (n_out, n_hid), dtype=jnp.float32)
    b2 = 0.1 * jax.random.normal(k_b2, (n_out,), dtype=jnp.float32)
    Wa = jnp.zeros((n_out,), dtype=jnp.float32)              # nn.Parameter(torch.zeros)
    adj_A = 0.1 * jax.random.normal(k_adj, (d, d), dtype=jnp.float32)
    z = jnp.float32(0.1)                                     # tol
    z_positive = jnp.ones((d, d), dtype=jnp.float32)

    # Input in the PyTorch call layout: (batch, n_xdims, n_nodes)
    inputs = jax.random.normal(k_inp, (B, n_xdims, d), dtype=jnp.float32)

    out = mlp_encoder_forward(inputs, adj_A, W1, b1, W2, b2, Wa, z, z_positive)
    out = jax.block_until_ready(out)
    x, logits = out[0], out[1]

    x_ref, logits_ref = _reference_forward(inputs, adj_A, W1, b1, W2, b2, Wa)
    assert jnp.allclose(x, x_ref, atol=1e-5, rtol=1e-5)
    assert jnp.allclose(logits, logits_ref, atol=1e-5, rtol=1e-5)

    print("KERNEL_OK")
</pallas_src>

<mosaic_0001>
module attributes {stable_mosaic.version = 11 : i64} {
  func.func @_encoder_kernel(%arg0: i32, %arg1: memref<16x4xf32, #tpu.memory_space<vmem>>, %arg2: memref<4x32xf32, #tpu.memory_space<vmem>>, %arg3: memref<32x4xf32, #tpu.memory_space<vmem>>, %arg4: memref<3x32xf32, #tpu.memory_space<vmem>>, %arg5: memref<8x8xf32, #tpu.memory_space<vmem>>, %arg6: memref<16x8xf32, #tpu.memory_space<vmem>>) attributes {dimension_semantics = [#tpu.dimension_semantics<parallel>], iteration_bounds = array<i64: 1>, scalar_prefetch = 0 : i64, scratch_operands = 0 : i64, tpu.core_type = #tpu.core_type<tc>, window_params = [{transform_indices = @transform_0, window_bounds = array<i64: 16, 4>}, {pipeline_mode = #tpu.pipeline_mode<synchronous>, transform_indices = @transform_1, window_bounds = array<i64: 4, 32>}, {pipeline_mode = #tpu.pipeline_mode<synchronous>, transform_indices = @transform_2, window_bounds = array<i64: 32, 4>}, {pipeline_mode = #tpu.pipeline_mode<synchronous>, transform_indices = @transform_3, window_bounds = array<i64: 3, 32>}, {pipeline_mode = #tpu.pipeline_mode<synchronous>, transform_indices = @transform_4, window_bounds = array<i64: 8, 8>}, {transform_indices = @transform_5, window_bounds = array<i64: 16, 8>}]} {
    %c0 = arith.constant 0 : index
    %c0_0 = arith.constant 0 : index
    %0 = vector.load %arg4[%c0, %c0_0] : memref<3x32xf32, #tpu.memory_space<vmem>>, vector<1x32xf32>
    %c1 = arith.constant 1 : index
    %c0_1 = arith.constant 0 : index
    %1 = vector.load %arg4[%c1, %c0_1] : memref<3x32xf32, #tpu.memory_space<vmem>>, vector<1x4xf32>
    %c2 = arith.constant 2 : index
    %c0_2 = arith.constant 0 : index
    %2 = vector.load %arg4[%c2, %c0_2] : memref<3x32xf32, #tpu.memory_space<vmem>>, vector<1x4xf32>
    %c0_3 = arith.constant 0 : index
    %c0_4 = arith.constant 0 : index
    %3 = vector.load %arg1[%c0_3, %c0_4] : memref<16x4xf32, #tpu.memory_space<vmem>>, vector<16x4xf32>
    %c0_5 = arith.constant 0 : index
    %c0_6 = arith.constant 0 : index
    %4 = vector.load %arg2[%c0_5, %c0_6] : memref<4x32xf32, #tpu.memory_space<vmem>>, vector<4x32xf32>
    %cst = arith.constant dense<0.000000e+00> : vector<16x32xf32>
    %5 = tpu.matmul %3, %4, %cst {dimension_numbers = #tpu.dot_dimension_numbers<[1], [0], [0], [1], [0, 0, 1, 1], [], []>} : vector<16x4xf32>, vector<4x32xf32>, vector<16x32xf32> -> vector<16x32xf32>
    %6 = vector.broadcast %0 : vector<1x32xf32> to vector<16x32xf32>
    %7 = arith.addf %5, %6 : vector<16x32xf32>
    %cst_7 = arith.constant 0.000000e+00 : f32
    %8 = vector.broadcast %cst_7 : f32 to vector<16x32xf32>
    %9 = arith.maximumf %7, %8 : vector<16x32xf32>
    %c0_8 = arith.constant 0 : index
    %c0_9 = arith.constant 0 : index
    %10 = vector.load %arg3[%c0_8, %c0_9] : memref<32x4xf32, #tpu.memory_space<vmem>>, vector<32x4xf32>
    %cst_10 = arith.constant dense<0.000000e+00> : vector<16x4xf32>
    %11 = tpu.matmul %9, %10, %cst_10 {dimension_numbers = #tpu.dot_dimension_numbers<[1], [0], [0], [1], [0, 0, 1, 1], [], []>} : vector<16x32xf32>, vector<32x4xf32>, vector<16x4xf32> -> vector<16x4xf32>
    %12 = vector.broadcast %1 : vector<1x4xf32> to vector<16x4xf32>
    %13 = arith.addf %11, %12 : vector<16x4xf32>
    %c0_11 = arith.constant 0 : index
    %c0_12 = arith.constant 0 : index
    %14 = vector.load %arg5[%c0_11, %c0_12] : memref<8x8xf32, #tpu.memory_space<vmem>>, vector<8x8xf32>
    %15 = vector.broadcast %2 : vector<1x4xf32> to vector<16x4xf32>
    %16 = arith.addf %13, %15 : vector<16x4xf32>
    %17 = vector.extract_strided_slice %16 {offsets = [0, 0], sizes = [8, 4], strides = [1, 1]} : vector<16x4xf32> to vector<8x4xf32>
    %cst_13 = arith.constant dense<0.000000e+00> : vector<8x4xf32>
    %18 = tpu.matmul %14, %17, %cst_13 {dimension_numbers = #tpu.dot_dimension_numbers<[1], [0], [0], [1], [0, 0, 1, 1], [], []>} : vector<8x8xf32>, vector<8x4xf32>, vector<8x4xf32> -> vector<8x4xf32>
    %19 = vector.broadcast %2 : vector<1x4xf32> to vector<8x4xf32>
    %20 = arith.subf %18, %19 : vector<8x4xf32>
    %21 = vector.extract_strided_slice %16 {offsets = [8, 0], sizes = [8, 4], strides = [1, 1]} : vector<16x4xf32> to vector<8x4xf32>
    %cst_14 = arith.constant dense<0.000000e+00> : vector<8x4xf32>
    %22 = tpu.matmul %14, %21, %cst_14 {dimension_numbers = #tpu.dot_dimension_numbers<[1], [0], [0], [1], [0, 0, 1, 1], [], []>} : vector<8x8xf32>, vector<8x4xf32>, vector<8x4xf32> -> vector<8x4xf32>
    %23 = vector.broadcast %2 : vector<1x4xf32> to vector<8x4xf32>
    %24 = arith.subf %22, %23 : vector<8x4xf32>
    %25 = tpu.concatenate %20, %24 in 0 : vector<8x4xf32>, vector<8x4xf32> -> vector<16x4xf32>
    %26 = tpu.concatenate %13, %25 in 1 : vector<16x4xf32>, vector<16x4xf32> -> vector<16x8xf32>
    %c0_15 = arith.constant 0 : index
    %c0_16 = arith.constant 0 : index
    %27 = vector.load %arg6[%c0_15, %c0_16] : memref<16x8xf32, #tpu.memory_space<vmem>>, vector<16x8xf32>
    tpu.vector_store %arg6[%c0_15, %c0_16], %26 {strides = array<i32>} : memref<16x8xf32, #tpu.memory_space<vmem>>, vector<16x8xf32>,
    return
  }
  func.func @transform_0(%arg0: i32) -> (i32, i32) {
    %c0_i32 = arith.constant 0 : i32
    %c0_i32_0 = arith.constant 0 : i32
    return %arg0, %c0_i32 : i32, i32
  }
  func.func @transform_1(%arg0: i32) -> (i32, i32) {
    %c0_i32 = arith.constant 0 : i32
    %c0_i32_0 = arith.constant 0 : i32
    %c0_i32_1 = arith.constant 0 : i32
    return %c0_i32, %c0_i32_0 : i32, i32
  }
  func.func @transform_2(%arg0: i32) -> (i32, i32) {
    %c0_i32 = arith.constant 0 : i32
    %c0_i32_0 = arith.constant 0 : i32
    %c0_i32_1 = arith.constant 0 : i32
    return %c0_i32, %c0_i32_0 : i32, i32
  }
  func.func @transform_3(%arg0: i32) -> (i32, i32) {
    %c0_i32 = arith.constant 0 : i32
    %c0_i32_0 = arith.constant 0 : i32
    %c0_i32_1 = arith.constant 0 : i32
    return %c0_i32, %c0_i32_0 : i32, i32
  }
  func.func @transform_4(%arg0: i32) -> (i32, i32) {
    %c0_i32 = arith.constant 0 : i32
    %c0_i32_0 = arith.constant 0 : i32
    %c0_i32_1 = arith.constant 0 : i32
    return %c0_i32, %c0_i32_0 : i32, i32
  }
  func.func @transform_5(%arg0: i32) -> (i32, i32) {
    %c0_i32 = arith.constant 0 : i32
    %c0_i32_0 = arith.constant 0 : i32
    return %arg0, %c0_i32 : i32, i32
  }
}

</mosaic_0001>

<bundles_post_ra>
// kernel: mlp_encoder_forward.1
= control target key start
LH: loop header
LB: loop body
LE: loop exit
PB: predicated region body
PF: predicated region fallthrough
CT: control target
= control target key end

     0   :  { %vm37_vm0 = vcmask 1043456   ;;  %vm30_vm1 = vcmask 31744   ;;  %vm126_vm2 = vcmask 261120   ;;  %v437_v16 = vmov 0.0   ;;  %s519_s1 = inlined_call_operand.vmem [shape: f32[4,32], index: 1, kind: input, shape index: {}]   ;;  %s520_s0 = inlined_call_operand.vmem [shape: f32[16,4], index: 0, kind: input, shape index: {}]   ;;  %s521_s2 = inlined_call_operand.vmem [shape: f32[32,4], index: 2, kind: input, shape index: {}]   ;;  %s522_s3 = inlined_call_operand.vmem [shape: f32[3,32], index: 3, kind: input, shape index: {}]   ;;  %s523_s4 = inlined_call_operand.vmem [shape: f32[8,8], index: 4, kind: input, shape index: {}]   ;;  %s524_s5 = inlined_call_operand.vmem [shape: f32[16,8], index: 5, kind: output, shape index: {}]  }
   0x1   :  { %v25_v0 = vld [vmem:[%s519_s1] sm:$0xf]  ;;  %v24_v2 = vld [vmem:[%s520_s0 + $0x8] sm:$0xff]  ;;  %v120_v6 = vld [vmem:[%s521_s2 + $0x10] sm:$0xff]  ;;  %vm438_vm3 = vmmov 0   ;;  %vm215_vm4 = vcmask 64512  }
   0x2   :  { %v23_v1 = vld [vmem:[%s520_s0] sm:$0xff]  ;;  %400 = vmatprep.subr.msk.mxu0 %vm37_vm0, %v25_v0  ;;  %v119_v4 = vld [vmem:[%s521_s2 + $0x8] sm:$0xff]  ;;  %v121_v7 = vld [vmem:[%s521_s2 + $0x18] sm:$0xff] }
   0x3   :  { %402 = vmatprep.mubr.msk.f32.mxu0 %vm30_vm1, %v23_v1  ;;  %v118_v3 = vld [vmem:[%s521_s2] sm:$0xff]  ;;  %401 = vmatpush3.msk.msra.mxu0 %vm37_vm0, %v25_v0  ;;  %v430_v8 = vpack.c.bf16 %v121_v7, %v120_v6 }
   0x4   :  { %v426_v5 = vpack.c.bf16 %v119_v4, %v118_v3  ;;  %403 = vmatmul.mubr.msk.f32.vlgmr.msra.gmra.mrb[0].mxu0 %vm30_vm1, %v24_v2  ;;  %v377_v9 = vld [vmem:[%s522_s3] ss:$0 sm:$0xff]  ;;  %416 = vmatprep.subr.mxu0 %v437_v16  ;;  %v381_v17 = vld [vmem:[%s522_s3 + $0x1] ss:$0 sm:$0xff]  ;;  %v384_v19 = vld [vmem:[%s522_s3 + $0x2] ss:$0 sm:$0xff] }
   0x5   :  { %418 = vmatprep.mubr.msk.f32.mxu0 %vm438_vm3, %v437_v16  ;;  %v208_v24 = vld [vmem:[%s523_s4] sm:$0xff]  ;;  %s439_s3 = smov 4  }
   0x6   :  { %427 = vmatprep.subr.bf16.mxu1 %v426_v5 }
   0x7   :  { %429 = vmatpush3.bf16.msra.mxu1 %v426_v5 }
   0x8   :  { %431 = vmatprep.subr.bf16.mxu1 %v430_v8 }
   0xb   :  { %433 = vmatpush3.bf16.msra.mxu1 %v430_v8 }
  0xd7   :  { %v404_v10 = vpop.f32.mrb[0].mxu0 }
  0xd8   :  { %v113_v11 = vadd.f32 %v404_v10, %v377_v9  ;;  %v107_v12 = vpop.f32.mrb[1].mxu0 }
  0xd9   :  { %v108_v13 = vadd.f32 %v377_v9, %v107_v12 }
  0xda   :  { %v117_v15 = vmax.f32 %v113_v11, 0.0 }
  0xdb   :  { %v116_v14 = vmax.f32 %v108_v13, 0.0 }
  0xdd   :  { %413 = vmatprep.mubr.msk.f32.mxu1 %vm126_vm2, %v116_v14 }
  0xde   :  { %414 = vmatmul.mubr.msk.f32.vlgmr.msra.gmra.mrb[0].mxu1 %vm126_vm2, %v117_v15 }
 0x1b1   :  { %v415_v18 = vpop.f32.mrb[0].mxu1 }
 0x1b2   :  { %v199_v20 = vpop.f32.mrb[1].mxu1  ;;  %v205_v21 = vadd.f32 %v415_v18, %v381_v17 }
 0x1b3   :  { %v200_v22 = vadd.f32 %v381_v17, %v199_v20 }
 0x1b4   :  { %v214_v25 = vadd.f32 %v384_v19, %v205_v21 }
 0x1b5   :  { %v213_v23 = vadd.f32 %v384_v19, %v200_v22 }
 0x1b7   :  { %417 = vmatpush3.msra.mxu0 %v213_v23 }
 0x1b8   :  { %419 = vmatmul.mubr.msk.f32.vlgmr.msra.gmra.mrb[2].mxu0 %vm215_vm4, %v208_v24  ;;  %421 = vmatprep.subr.mxu0 %v437_v16 }
 0x1b9   :  { %422 = vmatpush3.msra.mxu0 %v214_v25  ;;  %423 = vmatprep.mubr.msk.f32.mxu0 %vm438_vm3, %v437_v16 }
 0x1bc   :  { %424 = vmatmul.mubr.msk.f32.vlgmr.msra.gmra.mrb[4].mxu0 %vm215_vm4, %v208_v24 }
 0x28b   :  { %v285_v26 = vpop.f32.mrb[2].mxu0 }
 0x28c   :  { %v289_v27 = vsub.f32 %v285_v26, %v384_v19  ;;  %v420_v28 = vpop.f32.mrb[3].mxu0 }
 0x28e   :  { %363 = vrot.lane.b32.xlu0 %v289_v27, %s439_s3 }
 0x28f   :  { %v356_v29 = vpop.f32.mrb[4].mxu0 }
 0x290   :  { %v360_v30 = vsub.f32 %v356_v29, %v384_v19  ;;  %v425_v31 = vpop.f32.mrb[5].mxu0 }
 0x292   :  { %365 = vrot.lane.b32.xlu0 %v360_v30, %s439_s3 }
 0x300   :  { %v364_v32 = vpop.permute.xlu0 %363 }
 0x301   :  { %v369_v33 = vsel %vm30_vm1, %v200_v22, %v364_v32 }
 0x302   :  { %371 = vst.msk [vmem:[%s524_s5] sm:$0xff] %vm215_vm4, %v369_v33 }
 0x304   :  { %v366_v34 = vpop.permute.xlu0 %365 }
 0x305   :  { %v370_v35 = vsel %vm30_vm1, %v205_v21, %v366_v34 }
 0x306   :  { %372 = vst.msk [vmem:[%s524_s5 + $0x8] sm:$0xff] %vm215_vm4, %v370_v35 }

</bundles_post_ra>
